<compile_context>
chip_gen: v6e
topology: v6e:2x2x1
jax: 0.10.0
libtpu: 0.0.40
codegen_flags: <defaults>
</compile_context>

<pallas_src>
import functools

import numpy as np
import jax
import jax.numpy as jnp
from jax import lax
from jax.experimental import pallas as pl
from jax.experimental.pallas import tpu as pltpu


def _erf_f32(x):
    # Abramowitz & Stegun 7.1.26 rational approximation (max abs err ~1.5e-7),
    # matching torch's exact-erf nn.GELU() to well within the 1e-4 tolerance.
    # The divide is kept exact: pl.reciprocal(approx=True) would inject ~1e-4
    # relative error into erf and risk the comparison against exact erf.
    sgn = jnp.where(x >= 0.0, 1.0, -1.0)
    ax = x * sgn
    t = 1.0 / (1.0 + 0.3275911 * ax)
    poly = t * (0.254829592
                + t * (-0.284496736
                       + t * (1.421413741
                              + t * (-1.453152027 + t * 1.061405429))))
    y = 1.0 - poly * jnp.exp(-(ax * ax))
    return sgn * y


def _gnn_layer_kernel(x_ref, edges_ref, w_cat_ref, gamma_ref, beta_ref,
                      w_dense_ref, b_dense_ref, out_ref, *,
                      num_edge_types, ln_eps):
    x = x_ref[...]                                    # [N, H] f32
    n_nodes, hidden = x.shape

    # Edge table rows, E on the lane axis.
    et = edges_ref[0:1, :]                            # [1, E] int32 (edge type)
    src = edges_ref[1:2, :]                           # [1, E] int32 (source)
    tgt = edges_ref[2:3, :]                           # [1, E] int32 (target)
    n_e = et.shape[1]

    # Node-major one-hots built directly in [N, E] orientation (no transpose
    # needed for the scatter matmul below).
    node_iota = lax.broadcasted_iota(jnp.int32, (n_nodes, n_e), 0)   # [N, E]
    src_oh = jnp.where(src == node_iota, 1.0, 0.0)    # [N, E] f32
    tgt_oh = jnp.where(tgt == node_iota, 1.0, 0.0)    # [N, E] f32

    # --- gather (type-independent, hoisted out of the edge-type loop):
    #     feature-major gathered states [H, E].
    x_t = x.T                                         # [H, N]
    src_states_t = jnp.dot(x_t, src_oh, preferred_element_type=jnp.float32)
    tgt_states_t = jnp.dot(x_t, tgt_oh, preferred_element_type=jnp.float32)

    # --- per-type masking on the lane axis, then ONE fused message matmul
    #     with K = T*2H (instead of 2*T tiny K=H matmuls).
    parts = []
    for t in range(num_edge_types):
        mask_t = et == (t + 1)                        # [1, E] bool (1-indexed types)
        parts.append(jnp.where(mask_t, src_states_t, 0.0))   # [H, E]
        parts.append(jnp.where(mask_t, tgt_states_t, 0.0))   # [H, E]
    m_t = jnp.concatenate(parts, axis=0)              # [T*2H, E]
    msgs_t = jnp.dot(w_cat_ref[...], m_t,
                     preferred_element_type=jnp.float32)     # [H, E]

    # --- scatter-sum messages into their target nodes: natural [N,E] @ [E,H].
    #     (edges with type outside [1, T] contribute zero messages, matching
    #     the reference loop.)
    agg = jnp.dot(tgt_oh, msgs_t.T,
                  preferred_element_type=jnp.float32)        # [N, H]

    # --- state update: GELU(exact) -> LayerNorm -> Linear -> Tanh -> Dropout(p=0).
    g = 0.5 * agg * (1.0 + _erf_f32(agg * 0.7071067811865476))
    mu = jnp.mean(g, axis=-1, keepdims=True)
    var = jnp.mean((g - mu) ** 2, axis=-1, keepdims=True)
    normed = (g - mu) * lax.rsqrt(var + ln_eps)
    normed = normed * gamma_ref[...] + beta_ref[...]
    dense = jnp.dot(normed, w_dense_ref[...],
                    preferred_element_type=jnp.float32) + b_dense_ref[...]
    out_ref[...] = jnp.tanh(dense)


def residual_gnn_layer(state_embedding, typed_edges, params, *,
                       num_edge_types, ln_eps=1e-5):
    """Pallas implementation of ResidualGNNLayer.forward."""
    n, h = state_embedding.shape
    e = typed_edges.shape[1]
    o = params["w_dense"].shape[1]
    edges = typed_edges.astype(jnp.int32)              # [3, E], no transpose

    # Flatten per-type weights [T, 2H, H] into [H, T*2H]:
    #   w_cat[:, t*2H + k] = w_edge[t, k, :]   (msg = cat(src,tgt) @ w_edge[t])
    w_cat = jnp.transpose(params["w_edge"], (2, 0, 1)).reshape(
        h, num_edge_types * 2 * h)

    # NOTE: ln_eps passed as a plain Python float so it becomes a jaxpr
    # literal instead of a captured f32[] constant (previous compile error).
    kernel = functools.partial(_gnn_layer_kernel,
                               num_edge_types=int(num_edge_types),
                               ln_eps=float(ln_eps))

    # bf16 operand casting (v6e/v7x MXU) intentionally skipped: it would break
    # the 1e-4 agreement with the f32 reference at these hidden sizes.
    return pl.pallas_call(
        kernel,
        out_shape=jax.ShapeDtypeStruct((n, o), jnp.float32),
        grid=(1,),
        in_specs=[
            pl.BlockSpec((n, h), lambda i: (0, 0)),                     # state_embedding
            pl.BlockSpec((3, e), lambda i: (0, 0)),                     # typed_edges [3,E]
            pl.BlockSpec((h, num_edge_types * 2 * h), lambda i: (0, 0)),  # fused edge weights
            pl.BlockSpec((1, h), lambda i: (0, 0)),                     # ln gamma
            pl.BlockSpec((1, h), lambda i: (0, 0)),                     # ln beta
            pl.BlockSpec((h, o), lambda i: (0, 0)),                     # dense weight (H,O)
            pl.BlockSpec((1, o), lambda i: (0, 0)),                     # dense bias
        ],
        out_specs=pl.BlockSpec((n, o), lambda i: (0, 0)),
        compiler_params=pltpu.CompilerParams(
            dimension_semantics=("arbitrary",)),
    )(state_embedding, edges, w_cat, params["gamma"], params["beta"],
      params["w_dense"], params["b_dense"])


def reference_forward(x, typed_edges, params, num_edge_types, ln_eps=1e-5):
    """Pure-JAX reference mirroring the PyTorch forward."""
    et, src, tgt = typed_edges[0], typed_edges[1], typed_edges[2]
    n, h = x.shape
    agg = jnp.zeros((n, h), jnp.float32)
    for t in range(1, num_edge_types + 1):
        mask = et == t
        cat = jnp.concatenate([x[src], x[tgt]], axis=1)       # [E, 2H]
        msg = cat @ params["w_edge"][t - 1]                   # [E, H]
        msg = jnp.where(mask[:, None], msg, 0.0)
        agg = agg.at[tgt].add(msg)
    g = 0.5 * agg * (1.0 + jax.scipy.special.erf(agg / jnp.sqrt(2.0)))
    mu = g.mean(-1, keepdims=True)
    var = ((g - mu) ** 2).mean(-1, keepdims=True)
    normed = (g - mu) / jnp.sqrt(var + ln_eps)
    normed = normed * params["gamma"] + params["beta"]
    return jnp.tanh(normed @ params["w_dense"] + params["b_dense"])


if __name__ == "__main__":
    N, H, O, E, T = 16, 32, 32, 32, 3   # nodes, hidden, output, edges, edge types

    key = jax.random.PRNGKey(0)
    ks = jax.random.split(key, 8)

    # Deterministic synthetic parameters (shapes follow the module __init__).
    params = {
        # T x nn.Linear(2H, H, bias=False), stored pre-transposed [T, 2H, H]
        "w_edge": jax.random.normal(ks[0], (T, 2 * H, H), jnp.float32)
                  * (1.0 / np.sqrt(2 * H)),
        "gamma": 1.0 + 0.1 * jax.random.normal(ks[1], (1, H), jnp.float32),
        "beta": 0.1 * jax.random.normal(ks[2], (1, H), jnp.float32),
        # nn.Linear(H, O) with xavier_uniform-scale weight, stored as [H, O]
        "w_dense": jax.random.uniform(ks[3], (H, O), jnp.float32,
                                      minval=-1.0, maxval=1.0)
                   * np.sqrt(6.0 / (H + O)),
        "b_dense": 0.1 * jax.random.normal(ks[4], (1, O), jnp.float32),
    }

    state_embedding = jax.random.normal(ks[5], (N, H), jnp.float32)
    edge_types = jax.random.randint(ks[6], (1, E), 1, T + 1, jnp.int32)
    src_tgt = jax.random.randint(ks[7], (2, E), 0, N, jnp.int32)
    typed_edges = jnp.concatenate([edge_types, src_tgt], axis=0)   # [3, E]

    out = residual_gnn_layer(state_embedding, typed_edges, params,
                             num_edge_types=T)
    out = jax.block_until_ready(out)

    ref = jax.block_until_ready(
        reference_forward(state_embedding, typed_edges, params, T))

    assert out.shape == (N, O), out.shape
    np.testing.assert_allclose(np.asarray(out), np.asarray(ref),
                               rtol=1e-4, atol=1e-4)
    print("KERNEL_OK")
</pallas_src>

<mosaic_0001>
module attributes {stable_mosaic.version = 11 : i64} {
  func.func @_gnn_layer_kernel(%arg0: i32, %arg1: memref<16x32xf32, #tpu.memory_space<vmem>>, %arg2: memref<3x32xi32, #tpu.memory_space<vmem>>, %arg3: memref<32x192xf32, #tpu.memory_space<vmem>>, %arg4: memref<1x32xf32, #tpu.memory_space<vmem>>, %arg5: memref<1x32xf32, #tpu.memory_space<vmem>>, %arg6: memref<32x32xf32, #tpu.memory_space<vmem>>, %arg7: memref<1x32xf32, #tpu.memory_space<vmem>>, %arg8: memref<16x32xf32, #tpu.memory_space<vmem>>) attributes {dimension_semantics = [#tpu.dimension_semantics<arbitrary>], iteration_bounds = array<i64: 1>, scalar_prefetch = 0 : i64, scratch_operands = 0 : i64, tpu.core_type = #tpu.core_type<tc>, window_params = [{pipeline_mode = #tpu.pipeline_mode<synchronous>, transform_indices = @transform_0, window_bounds = array<i64: 16, 32>}, {pipeline_mode = #tpu.pipeline_mode<synchronous>, transform_indices = @transform_1, window_bounds = array<i64: 3, 32>}, {pipeline_mode = #tpu.pipeline_mode<synchronous>, transform_indices = @transform_2, window_bounds = array<i64: 32, 192>}, {pipeline_mode = #tpu.pipeline_mode<synchronous>, transform_indices = @transform_3, window_bounds = array<i64: 1, 32>}, {pipeline_mode = #tpu.pipeline_mode<synchronous>, transform_indices = @transform_4, window_bounds = array<i64: 1, 32>}, {pipeline_mode = #tpu.pipeline_mode<synchronous>, transform_indices = @transform_5, window_bounds = array<i64: 32, 32>}, {pipeline_mode = #tpu.pipeline_mode<synchronous>, transform_indices = @transform_6, window_bounds = array<i64: 1, 32>}, {pipeline_mode = #tpu.pipeline_mode<synchronous>, transform_indices = @transform_7, window_bounds = array<i64: 16, 32>}]} {
    %c0 = arith.constant 0 : index
    %c0_0 = arith.constant 0 : index
    %0 = vector.load %arg1[%c0, %c0_0] : memref<16x32xf32, #tpu.memory_space<vmem>>, vector<16x32xf32>
    %c0_1 = arith.constant 0 : index
    %c0_2 = arith.constant 0 : index
    %1 = vector.load %arg2[%c0_1, %c0_2] : memref<3x32xi32, #tpu.memory_space<vmem>>, vector<1x32xi32>
    %c1 = arith.constant 1 : index
    %c0_3 = arith.constant 0 : index
    %2 = vector.load %arg2[%c1, %c0_3] : memref<3x32xi32, #tpu.memory_space<vmem>>, vector<1x32xi32>
    %c2 = arith.constant 2 : index
    %c0_4 = arith.constant 0 : index
    %3 = vector.load %arg2[%c2, %c0_4] : memref<3x32xi32, #tpu.memory_space<vmem>>, vector<1x32xi32>
    %4 = tpu.iota {dimensions = array<i32: 0>} : vector<16x32xi32>
    %5 = vector.broadcast %2 : vector<1x32xi32> to vector<16x32xi32>
    %6 = arith.cmpi eq, %5, %4 : vector<16x32xi32>
    %cst = arith.constant 1.000000e+00 : f32
    %cst_5 = arith.constant 0.000000e+00 : f32
    %7 = vector.broadcast %cst : f32 to vector<16x32xf32>
    %8 = vector.broadcast %cst_5 : f32 to vector<16x32xf32>
    %9 = arith.select %6, %7, %8 : vector<16x32xi1>, vector<16x32xf32>
    %10 = vector.broadcast %3 : vector<1x32xi32> to vector<16x32xi32>
    %11 = arith.cmpi eq, %10, %4 : vector<16x32xi32>
    %cst_6 = arith.constant 1.000000e+00 : f32
    %cst_7 = arith.constant 0.000000e+00 : f32
    %12 = vector.broadcast %cst_6 : f32 to vector<16x32xf32>
    %13 = vector.broadcast %cst_7 : f32 to vector<16x32xf32>
    %14 = arith.select %11, %12, %13 : vector<16x32xi1>, vector<16x32xf32>
    %15 = tpu.transpose %0, [1, 0] : vector<16x32xf32> -> vector<32x16xf32>
    %cst_8 = arith.constant dense<0.000000e+00> : vector<32x32xf32>
    %16 = tpu.matmul %15, %9, %cst_8 {dimension_numbers = #tpu.dot_dimension_numbers<[1], [0], [0], [1], [0, 0, 1, 1], [], []>} : vector<32x16xf32>, vector<16x32xf32>, vector<32x32xf32> -> vector<32x32xf32>
    %cst_9 = arith.constant dense<0.000000e+00> : vector<32x32xf32>
    %17 = tpu.matmul %15, %14, %cst_9 {dimension_numbers = #tpu.dot_dimension_numbers<[1], [0], [0], [1], [0, 0, 1, 1], [], []>} : vector<32x16xf32>, vector<16x32xf32>, vector<32x32xf32> -> vector<32x32xf32>
    %c1_i32 = arith.constant 1 : i32
    %18 = vector.broadcast %c1_i32 : i32 to vector<1x32xi32>
    %19 = arith.cmpi eq, %1, %18 : vector<1x32xi32>
    %cst_10 = arith.constant 0.000000e+00 : f32
    %20 = vector.shape_cast %19 : vector<1x32xi1> to vector<1x32xi1>
    %21 = vector.broadcast %20 : vector<1x32xi1> to vector<32x32xi1>
    %22 = vector.broadcast %cst_10 : f32 to vector<32x32xf32>
    %23 = arith.select %21, %16, %22 : vector<32x32xi1>, vector<32x32xf32>
    %cst_11 = arith.constant 0.000000e+00 : f32
    %24 = vector.shape_cast %19 : vector<1x32xi1> to vector<1x32xi1>
    %25 = vector.broadcast %24 : vector<1x32xi1> to vector<32x32xi1>
    %26 = vector.broadcast %cst_11 : f32 to vector<32x32xf32>
    %27 = arith.select %25, %17, %26 : vector<32x32xi1>, vector<32x32xf32>
    %c2_i32 = arith.constant 2 : i32
    %28 = vector.broadcast %c2_i32 : i32 to vector<1x32xi32>
    %29 = arith.cmpi eq, %1, %28 : vector<1x32xi32>
    %cst_12 = arith.constant 0.000000e+00 : f32
    %30 = vector.shape_cast %29 : vector<1x32xi1> to vector<1x32xi1>
    %31 = vector.broadcast %30 : vector<1x32xi1> to vector<32x32xi1>
    %32 = vector.broadcast %cst_12 : f32 to vector<32x32xf32>
    %33 = arith.select %31, %16, %32 : vector<32x32xi1>, vector<32x32xf32>
    %cst_13 = arith.constant 0.000000e+00 : f32
    %34 = vector.shape_cast %29 : vector<1x32xi1> to vector<1x32xi1>
    %35 = vector.broadcast %34 : vector<1x32xi1> to vector<32x32xi1>
    %36 = vector.broadcast %cst_13 : f32 to vector<32x32xf32>
    %37 = arith.select %35, %17, %36 : vector<32x32xi1>, vector<32x32xf32>
    %c3_i32 = arith.constant 3 : i32
    %38 = vector.broadcast %c3_i32 : i32 to vector<1x32xi32>
    %39 = arith.cmpi eq, %1, %38 : vector<1x32xi32>
    %cst_14 = arith.constant 0.000000e+00 : f32
    %40 = vector.shape_cast %39 : vector<1x32xi1> to vector<1x32xi1>
    %41 = vector.broadcast %40 : vector<1x32xi1> to vector<32x32xi1>
    %42 = vector.broadcast %cst_14 : f32 to vector<32x32xf32>
    %43 = arith.select %41, %16, %42 : vector<32x32xi1>, vector<32x32xf32>
    %cst_15 = arith.constant 0.000000e+00 : f32
    %44 = vector.shape_cast %39 : vector<1x32xi1> to vector<1x32xi1>
    %45 = vector.broadcast %44 : vector<1x32xi1> to vector<32x32xi1>
    %46 = vector.broadcast %cst_15 : f32 to vector<32x32xf32>
    %47 = arith.select %45, %17, %46 : vector<32x32xi1>, vector<32x32xf32>
    %48 = tpu.concatenate %23, %27, %33, %37, %43, %47 in 0 : vector<32x32xf32>, vector<32x32xf32>, vector<32x32xf32>, vector<32x32xf32>, vector<32x32xf32>, vector<32x32xf32> -> vector<192x32xf32>
    %c0_16 = arith.constant 0 : index
    %c0_17 = arith.constant 0 : index
    %49 = vector.load %arg3[%c0_16, %c0_17] : memref<32x192xf32, #tpu.memory_space<vmem>>, vector<32x192xf32>
    %cst_18 = arith.constant dense<0.000000e+00> : vector<32x32xf32>
    %50 = tpu.matmul %49, %48, %cst_18 {dimension_numbers = #tpu.dot_dimension_numbers<[1], [0], [0], [1], [0, 0, 1, 1], [], []>} : vector<32x192xf32>, vector<192x32xf32>, vector<32x32xf32> -> vector<32x32xf32>
    %51 = tpu.transpose %50, [1, 0] : vector<32x32xf32> -> vector<32x32xf32>
    %cst_19 = arith.constant dense<0.000000e+00> : vector<16x32xf32>
    %52 = tpu.matmul %14, %51, %cst_19 {dimension_numbers = #tpu.dot_dimension_numbers<[1], [0], [0], [1], [0, 0, 1, 1], [], []>} : vector<16x32xf32>, vector<32x32xf32>, vector<16x32xf32> -> vector<16x32xf32>
    %cst_20 = arith.constant 5.000000e-01 : f32
    %53 = vector.broadcast %cst_20 : f32 to vector<16x32xf32>
    %54 = arith.mulf %53, %52 : vector<16x32xf32>
    %cst_21 = arith.constant 0.707106769 : f32
    %55 = vector.broadcast %cst_21 : f32 to vector<16x32xf32>
    %56 = arith.mulf %52, %55 : vector<16x32xf32>
    %cst_22 = arith.constant 0.000000e+00 : f32
    %57 = vector.broadcast %cst_22 : f32 to vector<16x32xf32>
    %58 = arith.cmpf oge, %56, %57 : vector<16x32xf32>
    %cst_23 = arith.constant 1.000000e+00 : f32
    %cst_24 = arith.constant -1.000000e+00 : f32
    %59 = vector.broadcast %cst_23 : f32 to vector<16x32xf32>
    %60 = vector.broadcast %cst_24 : f32 to vector<16x32xf32>
    %61 = arith.select %58, %59, %60 : vector<16x32xi1>, vector<16x32xf32>
    %62 = arith.mulf %56, %61 : vector<16x32xf32>
    %cst_25 = arith.constant 0.327591091 : f32
    %63 = vector.broadcast %cst_25 : f32 to vector<16x32xf32>
    %64 = arith.mulf %63, %62 : vector<16x32xf32>
    %cst_26 = arith.constant 1.000000e+00 : f32
    %65 = vector.broadcast %cst_26 : f32 to vector<16x32xf32>
    %66 = arith.addf %65, %64 : vector<16x32xf32>
    %cst_27 = arith.constant 1.000000e+00 : f32
    %67 = vector.broadcast %cst_27 : f32 to vector<16x32xf32>
    %68 = arith.divf %67, %66 : vector<16x32xf32>
    %cst_28 = arith.constant 1.06140542 : f32
    %69 = vector.broadcast %cst_28 : f32 to vector<16x32xf32>
    %70 = arith.mulf %68, %69 : vector<16x32xf32>
    %cst_29 = arith.constant -1.45315206 : f32
    %71 = vector.broadcast %cst_29 : f32 to vector<16x32xf32>
    %72 = arith.addf %71, %70 : vector<16x32xf32>
    %73 = arith.mulf %68, %72 : vector<16x32xf32>
    %cst_30 = arith.constant 1.42141378 : f32
    %74 = vector.broadcast %cst_30 : f32 to vector<16x32xf32>
    %75 = arith.addf %74, %73 : vector<16x32xf32>
    %76 = arith.mulf %68, %75 : vector<16x32xf32>
    %cst_31 = arith.constant -0.284496725 : f32
    %77 = vector.broadcast %cst_31 : f32 to vector<16x32xf32>
    %78 = arith.addf %77, %76 : vector<16x32xf32>
    %79 = arith.mulf %68, %78 : vector<16x32xf32>
    %cst_32 = arith.constant 0.254829586 : f32
    %80 = vector.broadcast %cst_32 : f32 to vector<16x32xf32>
    %81 = arith.addf %80, %79 : vector<16x32xf32>
    %82 = arith.mulf %68, %81 : vector<16x32xf32>
    %83 = arith.mulf %62, %62 : vector<16x32xf32>
    %cst_33 = arith.constant 0.000000e+00 : f32
    %84 = vector.broadcast %cst_33 : f32 to vector<16x32xf32>
    %85 = arith.subf %84, %83 : vector<16x32xf32>
    %86 = math.exp %85 : vector<16x32xf32>
    %87 = arith.mulf %82, %86 : vector<16x32xf32>
    %cst_34 = arith.constant 1.000000e+00 : f32
    %88 = vector.broadcast %cst_34 : f32 to vector<16x32xf32>
    %89 = arith.subf %88, %87 : vector<16x32xf32>
    %90 = arith.mulf %61, %89 : vector<16x32xf32>
    %cst_35 = arith.constant 1.000000e+00 : f32
    %91 = vector.broadcast %cst_35 : f32 to vector<16x32xf32>
    %92 = arith.addf %91, %90 : vector<16x32xf32>
    %93 = arith.mulf %54, %92 : vector<16x32xf32>
    %cst_36 = arith.constant dense<0.000000e+00> : vector<16xf32>
    %94 = vector.multi_reduction <add>, %93, %cst_36 [1] : vector<16x32xf32> to vector<16xf32>
    %95 = vector.shape_cast %94 : vector<16xf32> to vector<16x1xf32>
    %cst_37 = arith.constant 3.200000e+01 : f32
    %96 = vector.broadcast %cst_37 : f32 to vector<16x1xf32>
    %97 = arith.divf %95, %96 : vector<16x1xf32>
    %98 = vector.broadcast %97 : vector<16x1xf32> to vector<16x32xf32>
    %99 = arith.subf %93, %98 : vector<16x32xf32>
    %100 = arith.mulf %99, %99 : vector<16x32xf32>
    %cst_38 = arith.constant dense<0.000000e+00> : vector<16xf32>
    %101 = vector.multi_reduction <add>, %100, %cst_38 [1] : vector<16x32xf32> to vector<16xf32>
    %102 = vector.shape_cast %101 : vector<16xf32> to vector<16x1xf32>
    %cst_39 = arith.constant 3.200000e+01 : f32
    %103 = vector.broadcast %cst_39 : f32 to vector<16x1xf32>
    %104 = arith.divf %102, %103 : vector<16x1xf32>
    %105 = vector.broadcast %97 : vector<16x1xf32> to vector<16x32xf32>
    %106 = arith.subf %93, %105 : vector<16x32xf32>
    %cst_40 = arith.constant 9.99999974E-6 : f32
    %107 = vector.broadcast %cst_40 : f32 to vector<16x1xf32>
    %108 = arith.addf %104, %107 : vector<16x1xf32>
    %109 = math.rsqrt %108 : vector<16x1xf32>
    %110 = vector.broadcast %109 : vector<16x1xf32> to vector<16x32xf32>
    %111 = arith.mulf %106, %110 : vector<16x32xf32>
    %c0_41 = arith.constant 0 : index
    %c0_42 = arith.constant 0 : index
    %112 = vector.load %arg4[%c0_41, %c0_42] : memref<1x32xf32, #tpu.memory_space<vmem>>, vector<1x32xf32>
    %113 = vector.broadcast %112 : vector<1x32xf32> to vector<16x32xf32>
    %114 = arith.mulf %111, %113 : vector<16x32xf32>
    %c0_43 = arith.constant 0 : index
    %c0_44 = arith.constant 0 : index
    %115 = vector.load %arg5[%c0_43, %c0_44] : memref<1x32xf32, #tpu.memory_space<vmem>>, vector<1x32xf32>
    %116 = vector.broadcast %115 : vector<1x32xf32> to vector<16x32xf32>
    %117 = arith.addf %114, %116 : vector<16x32xf32>
    %c0_45 = arith.constant 0 : index
    %c0_46 = arith.constant 0 : index
    %118 = vector.load %arg6[%c0_45, %c0_46] : memref<32x32xf32, #tpu.memory_space<vmem>>, vector<32x32xf32>
    %cst_47 = arith.constant dense<0.000000e+00> : vector<16x32xf32>
    %119 = tpu.matmul %117, %118, %cst_47 {dimension_numbers = #tpu.dot_dimension_numbers<[1], [0], [0], [1], [0, 0, 1, 1], [], []>} : vector<16x32xf32>, vector<32x32xf32>, vector<16x32xf32> -> vector<16x32xf32>
    %c0_48 = arith.constant 0 : index
    %c0_49 = arith.constant 0 : index
    %120 = vector.load %arg7[%c0_48, %c0_49] : memref<1x32xf32, #tpu.memory_space<vmem>>, vector<1x32xf32>
    %121 = vector.broadcast %120 : vector<1x32xf32> to vector<16x32xf32>
    %122 = arith.addf %119, %121 : vector<16x32xf32>
    %123 = math.tanh %122 : vector<16x32xf32>
    %c0_50 = arith.constant 0 : index
    %c0_51 = arith.constant 0 : index
    %124 = vector.load %arg8[%c0_50, %c0_51] : memref<16x32xf32, #tpu.memory_space<vmem>>, vector<16x32xf32>
    tpu.vector_store %arg8[%c0_50, %c0_51], %123 {strides = array<i32>} : memref<16x32xf32, #tpu.memory_space<vmem>>, vector<16x32xf32>,
    return
  }
  func.func @transform_0(%arg0: i32) -> (i32, i32) {
    %c0_i32 = arith.constant 0 : i32
    %c0_i32_0 = arith.constant 0 : i32
    %c0_i32_1 = arith.constant 0 : i32
    return %c0_i32, %c0_i32_0 : i32, i32
  }
  func.func @transform_1(%arg0: i32) -> (i32, i32) {
    %c0_i32 = arith.constant 0 : i32
    %c0_i32_0 = arith.constant 0 : i32
    %c0_i32_1 = arith.constant 0 : i32
    return %c0_i32, %c0_i32_0 : i32, i32
  }
  func.func @transform_2(%arg0: i32) -> (i32, i32) {
    %c0_i32 = arith.constant 0 : i32
    %c0_i32_0 = arith.constant 0 : i32
    %c0_i32_1 = arith.constant 0 : i32
    return %c0_i32, %c0_i32_0 : i32, i32
  }
  func.func @transform_3(%arg0: i32) -> (i32, i32) {
    %c0_i32 = arith.constant 0 : i32
    %c0_i32_0 = arith.constant 0 : i32
    %c0_i32_1 = arith.constant 0 : i32
    return %c0_i32, %c0_i32_0 : i32, i32
  }
  func.func @transform_4(%arg0: i32) -> (i32, i32) {
    %c0_i32 = arith.constant 0 : i32
    %c0_i32_0 = arith.constant 0 : i32
    %c0_i32_1 = arith.constant 0 : i32
    return %c0_i32, %c0_i32_0 : i32, i32
  }
  func.func @transform_5(%arg0: i32) -> (i32, i32) {
    %c0_i32 = arith.constant 0 : i32
    %c0_i32_0 = arith.constant 0 : i32
    %c0_i32_1 = arith.constant 0 : i32
    return %c0_i32, %c0_i32_0 : i32, i32
  }
  func.func @transform_6(%arg0: i32) -> (i32, i32) {
    %c0_i32 = arith.constant 0 : i32
    %c0_i32_0 = arith.constant 0 : i32
    %c0_i32_1 = arith.constant 0 : i32
    return %c0_i32, %c0_i32_0 : i32, i32
  }
  func.func @transform_7(%arg0: i32) -> (i32, i32) {
    %c0_i32 = arith.constant 0 : i32
    %c0_i32_0 = arith.constant 0 : i32
    %c0_i32_1 = arith.constant 0 : i32
    return %c0_i32, %c0_i32_0 : i32, i32
  }
}

</mosaic_0001>

<bundles_post_ra>
// kernel: tpu_custom_call.1
= control target key start
LH: loop header
LB: loop body
LE: loop exit
PB: predicated region body
PF: predicated region fallthrough
CT: control target
= control target key end

     0   :  { %12 = vsyncpa [#allocation3], 0  ;;  %s1270_s0 = inlined_call_operand.hbm [shape: f32[16,32], index: 0, kind: input, shape index: {}]   ;;  %s1271_s1 = inlined_call_operand.hbm [shape: s32[3,32], index: 1, kind: input, shape index: {}]   ;;  %s1272_s2 = inlined_call_operand.hbm [shape: f32[32,192], index: 2, kind: input, shape index: {}]   ;;  %s1273_s3 = inlined_call_operand.vmem [shape: f32[1,32], index: 3, kind: input, shape index: {}]   ;;  %s1274_s4 = inlined_call_operand.vmem [shape: f32[1,32], index: 4, kind: input, shape index: {}]   ;;  %s1275_s5 = inlined_call_operand.hbm [shape: f32[32,32], index: 5, kind: input, shape index: {}]   ;;  %s1276_s6 = inlined_call_operand.vmem [shape: f32[1,32], index: 6, kind: input, shape index: {}]   ;;  %s1277_s7 = inlined_call_operand.hbm [shape: f32[16,32], index: 7, kind: output, shape index: {}]  }
   0x1   :  { %13 = vsyncpa [#allocation6], 0 }
   0x2   :  { %14 = vsyncpa [#allocation9], 0 }
   0x3   :  { %15 = vsyncpa [#allocation4], 0  ;;  %s1034_s24 = smov [#allocation5]   ;;  %s1035_s26 = smov [#allocation2]  }
   0x4   :  { %s34_s25 = sshll.u32 %s1034_s24, 4  ;;  %s21_s27 = sshll.u32 %s1035_s26, 4  ;;  %s35_s25 = int_to_ptr.vmem [resolvable:$true] %s34_s25  ;;  %s22_s27 = int_to_ptr.vmem [resolvable:$true] %s21_s27 }
   0x5   :  { %s934_s28 = scalar_lea.vmem %s35_s25, 64  ;;  %p939_p1 = scmp.lt.s32.totalorder %s35_s25, %s35_s25 }
   0x6   :  { %p935_p0 = scmp.ne.s32.totalorder %s35_s25, %s934_s28  ;;  %p940_p2 = scmp.lt.s32.totalorder %s934_s28, %s934_s28 }
   0x8   :  { %p941_p3 = por %p940_p2, %p939_p1 }
   0xa   :  { %p942_p4 = pnand %p941_p3, %p935_p0 }
   0xc   :  { %945 = shalt.err (!%p942_p4)
}
   0xd   :  { %37 = dma.hbm_to_vmem [thread:$0]  %s1271_s1, 64, %s35_s25, [#allocation6]  }
   0xe   :  { %s954_s8 = scalar_lea.vmem %s22_s27, 256  ;;  %p959_p6 = scmp.lt.s32.totalorder %s22_s27, %s22_s27 }
   0xf   :  { %p955_p5 = scmp.ne.s32.totalorder %s22_s27, %s954_s8  ;;  %p960_p7 = scmp.lt.s32.totalorder %s954_s8, %s954_s8 }
  0x11   :  { %p961_p8 = por %p960_p7, %p959_p6 }
  0x13   :  { %p962_p9 = pnand %p961_p8, %p955_p5 }
  0x15   :  { %965 = shalt.err (!%p962_p9)
}
  0x16   :  { %s1036_s9 = smov 128   ;;  %s1037_s10 = smov 8  }
  0x17   :  { %27 = dma.hbm_to_vmem [thread:$0]  %s1270_s0, 256, %s22_s27, [#allocation3], %s1036_s9, %s1036_s9, %s1037_s10  }
  0x18   :  { %s1038_s13 = smov [#allocation7]  }
  0x19   :  { %s43_s14 = sshll.u32 %s1038_s13, 4  ;;  %s44_s14 = int_to_ptr.vmem [resolvable:$true] %s43_s14 }
  0x1a   :  { %s974_s1 = scalar_lea.vmem %s44_s14, 1024  ;;  %p979_p11 = scmp.lt.s32.totalorder %s44_s14, %s44_s14 }
  0x1b   :  { %p975_p10 = scmp.ne.s32.totalorder %s44_s14, %s974_s1  ;;  %p980_p12 = scmp.lt.s32.totalorder %s974_s1, %s974_s1 }
  0x1d   :  { %p981_p13 = por %p980_p12, %p979_p11 }
  0x1f   :  { %p982_p0 = pnand %p981_p13, %p975_p10 }
  0x21   :  { %985 = shalt.err (!%p982_p0)
}
  0x22   :  { %s1039_s15 = smov 256   ;;  %s1040_s16 = smov 16  }
  0x23   :  { %49 = dma.hbm_to_vmem [thread:$0]  %s1272_s2, 1024, %s44_s14, [#allocation6], %s1039_s15, %s1039_s15, %s1040_s16  }
  0x24   :  { %s1041_s19 = smov [#allocation8]  }
  0x25   :  { %s59_s20 = sshll.u32 %s1041_s19, 4  ;;  %s60_s20 = int_to_ptr.vmem [resolvable:$true] %s59_s20 }
  0x26   :  { %s994_s0 = scalar_lea.vmem %s60_s20, 512  ;;  %p999_p2 = scmp.lt.s32.totalorder %s60_s20, %s60_s20 }
  0x27   :  { %p995_p1 = scmp.ne.s32.totalorder %s60_s20, %s994_s0  ;;  %p1000_p3 = scmp.lt.s32.totalorder %s994_s0, %s994_s0 }
  0x29   :  { %p1001_p4 = por %p1000_p3, %p999_p2 }
  0x2b   :  { %p1002_p5 = pnand %p1001_p4, %p995_p1 }
  0x2d   :  { %1005 = shalt.err (!%p1002_p5)
}
  0x2e   :  { %65 = dma.hbm_to_vmem [thread:$0]  %s1275_s5, 512, %s60_s20, [#allocation9], %s1036_s9, %s1036_s9, %s1037_s10  }
  0x2f   :  { %1026 = dma.done.wait [#allocation3], 256  }
  0x30   :  { %1027 = vsyncadd [#allocation3], 4294967040 }
  0x31   :  { %1028 = dma.done.wait [#allocation6], 1088  }
  0x32   :  { %1029 = vsyncadd [#allocation6], 4294966208 }
  0x33   :  { %1030 = dma.done.wait [#allocation9], 512  }
  0x34   :  { %1031 = vsyncadd [#allocation9], 4294966784  ;;  %v85_v0 = vlaneseq  ;;  %v80_v3 = vld [vmem:[#allocation2] sm:$0xff]  ;;  %v778_v4 = vld [vmem:[#allocation5 + $0x1] ss:$0 sm:$0xff]  ;;  %v1042_v6 = vmov 1.0  }
  0x35   :  { %104 = vxpose.xlu0.b32.start [1/2] (short) (narrow) %v80_v3, 32  ;;  %v81_v5 = vld [vmem:[#allocation2 + $0x8] sm:$0xff]  ;;  %v1112_v7 = vld [vmem:[#allocation5 + $0x2] ss:$0 sm:$0xff]  ;;  %v1043_v8 = vmov 0.0   ;;  %vm136_vm4 = vcmask 130048  }
  0x36   :  { %v1105_v1 = vshrl.u32 %v85_v0, 7  ;;  %385 = vmatprep.subr.mxu0 %v1043_v8  ;;  %v365_v13 = vld [vmem:[#allocation7 + $0x8] sm:$0xff]  ;;  %vm372_vm5 = vcmask 523264   ;;  %v82_v14 = vld [vmem:[#allocation5] sm:$0x1]  ;;  %v1044_v18 = vmov 0  }
  0x37   :  { %816 = vmatprep.mubr.msk.f32.mxu0 %vm372_vm5, %v365_v13  ;;  %vm334_vm6 = vcmp.eq.s32.totalorder %v82_v14, 2  ;;  %vm319_vm8 = vcmp.eq.s32.totalorder %v82_v14, 1  ;;  %vm349_vm10 = vcmp.eq.s32.totalorder %v82_v14, 3  ;;  %v364_v34 = vld [vmem:[#allocation7] sm:$0xff]  ;;  %v367_v35 = vld [vmem:[#allocation7 + $0x18] sm:$0xff]  ;;  %v366_v36 = vld [vmem:[#allocation7 + $0x10] sm:$0xff] }
  0x38   :  { %v1108_v2 = vadd.s32 8, %v1105_v1  ;;  %vm92_vm0 = vcmp.eq.s32.totalorder %v778_v4, %v1105_v1  ;;  %vm100_vm3 = vcmp.eq.s32.totalorder %v1112_v7, %v1105_v1  ;;  %v323_v16 = vsub.s32 0, %v1105_v1  ;;  %v369_v37 = vld [vmem:[#allocation7 + $0x28] sm:$0xff]  ;;  %v368_v38 = vld [vmem:[#allocation7 + $0x20] sm:$0xff]  ;;  %v371_v39 = vld [vmem:[#allocation7 + $0x38] sm:$0xff] }
  0x39   :  { %105 = vxpose.xlu0.b32.end [2/2] (short) (narrow) %v81_v5, 32  ;;  %v335_v19 = vsel %vm334_vm6, 1, %v1044_v18  ;;  %v320_v28 = vsel %vm319_vm8, 1, %v1044_v18  ;;  %v350_v31 = vsel %vm349_vm10, 1, %v1044_v18  ;;  %v370_v40 = vld [vmem:[#allocation7 + $0x30] sm:$0xff]  ;;  %vm470_vm12 = vcmask 261120  }
  0x3a   :  { %vm93_vm1 = vcmp.eq.s32.totalorder %v778_v4, %v1108_v2  ;;  %vm101_vm2 = vcmp.eq.s32.totalorder %v1112_v7, %v1108_v2  ;;  %v339_v22 = vrot.slane %v335_v19, %v323_v16  ;;  %v324_v29 = vrot.slane %v320_v28, %v323_v16 }
  0x3b   :  { %855 = vmatprep.subr.msk.mxu1 %vm93_vm1, %v1042_v6  ;;  %v354_v32 = vrot.slane %v350_v31, %v323_v16  ;;  %v102_v41 = vsel %vm100_vm3, 1.0, %v1043_v8  ;;  %v103_v50 = vsel %vm101_vm2, 1.0, %v1043_v8  ;;  %v1045_v55 = vmov -1.0  }
  0x3c   :  { %856 = vmatpush3.msk.msra.mxu1 %vm93_vm1, %v1042_v6  ;;  %vm1137_vm7 = vcmp.eq.s32.totalorder %v339_v22, 1  ;;  %vm1163_vm9 = vcmp.eq.s32.totalorder %v324_v29, 1 }
  0x3d   :  { %857 = vmatprep.subr.msk.mxu1 %vm92_vm0, %v1042_v6  ;;  %vm1193_vm11 = vcmp.eq.s32.totalorder %v354_v32, 1 }
  0x3e   :  { %858 = vmatpush3.msk.msra.mxu1 %vm92_vm0, %v1042_v6 }
  0x3f   :  { %865 = vmatprep.subr.msk.mxu1 %vm101_vm2, %v1042_v6 }
  0xb1   :  { %v120_v9 = vpop.trf.xlu0 }
  0xb2   :  { %859 = vmatprep.mubr.msk.f32.mxu1 %vm136_vm4, %v120_v9 }
  0xb5   :  { %v121_v10 = vpop.trf.xlu0 }
  0xb6   :  { %860 = vmatmul.mubr.msk.f32.vlgmr.msra.gmra.mxu1 %vm136_vm4, %v121_v10 }
  0xb7   :  { %866 = vmatpush3.msk.msra.mxu1 %vm101_vm2, %v1042_v6 }
  0xb8   :  { %867 = vmatprep.subr.msk.mxu1 %vm100_vm3, %v1042_v6 }
  0xb9   :  { %v122_v11 = vpop.trf.xlu0  ;;  %868 = vmatpush3.msk.msra.mxu1 %vm100_vm3, %v1042_v6 }
  0xba   :  { %862 = vmatprep.mubr.msk.f32.mxu1 %vm136_vm4, %v122_v11 }
  0xbd   :  { %v123_v12 = vpop.trf.xlu0 }
  0xbe   :  { %863 = vmatmul.mubr.msk.f32.gmra.mxu1 %vm136_vm4, %v123_v12 }
  0xbf   :  { %869 = vmatprep.mubr.msk.f32.mxu1 %vm136_vm4, %v120_v9 }
  0xc2   :  { %870 = vmatmul.mubr.msk.f32.vlgmr.msra.gmra.mxu1 %vm136_vm4, %v121_v10 }
  0xc3   :  { %872 = vmatprep.mubr.msk.f32.mxu1 %vm136_vm4, %v122_v11 }
  0xc6   :  { %873 = vmatmul.mubr.msk.f32.gmra.mxu1 %vm136_vm4, %v123_v12 }
  0xc7   :  { %883 = vmatprep.mubr.msk.f32.mxu1 %vm470_vm12, %v102_v41 }
 0x176   :  { %v1132_v15 = vpop.f32.mrf.mxu1 }
 0x178   :  { %v1135_v17 = vpop.f32.mrf.mxu1 }
 0x17e   :  { %v864_v20 = vpop.f32.mrf.mxu1 }
 0x180   :  { %v225_v21 = vpop.f32.mrf.mxu1 }
 0x182   :  { %v871_v23 = vpop.f32.mrf.mxu1 }
 0x184   :  { %v300_v24 = vpop.f32.mrf.mxu1 }
 0x186   :  { %v874_v26 = vpop.f32.mrf.mxu1 }
 0x187   :  { %792 = vmatpush1.msk.msra.mxu0 %vm1137_vm7, %v874_v26 }
 0x188   :  { %v310_v27 = vpop.f32.mrf.mxu1  ;;  %387 = vmatprep.subr.mxu0 %v1043_v8 }
 0x189   :  { %793 = vmatpush1.msk.msra.mxu0 %vm1137_vm7, %v310_v27 }
 0x18a   :  { %389 = vmatprep.subr.mxu0 %v1043_v8 }
 0x18b   :  { %794 = vmatpush1.msk.msra.mxu0 %vm1137_vm7, %v871_v23 }
 0x18c   :  { %391 = vmatprep.subr.mxu0 %v1043_v8 }
 0x18d   :  { %795 = vmatpush1.msk.msra.mxu0 %vm1137_vm7, %v300_v24 }
 0x18e   :  { %393 = vmatprep.subr.mxu0 %v1043_v8 }
 0x18f   :  { %796 = vmatpush1.msk.msra.mxu0 %vm1137_vm7, %v864_v20 }
 0x190   :  { %395 = vmatprep.subr.mxu0 %v1043_v8 }
 0x191   :  { %797 = vmatpush1.msk.msra.mxu0 %vm1137_vm7, %v225_v21 }
 0x192   :  { %397 = vmatprep.subr.mxu0 %v1043_v8 }
 0x193   :  { %798 = vmatpush1.msk.msra.mxu0 %vm1137_vm7, %v1132_v15 }
 0x194   :  { %399 = vmatprep.subr.mxu0 %v1043_v8 }
 0x195   :  { %799 = vmatpush1.msk.msra.mxu0 %vm1137_vm7, %v1135_v17 }
 0x196   :  { %401 = vmatprep.subr.mxu0 %v1043_v8 }
 0x197   :  { %800 = vmatpush1.msk.msra.mxu0 %vm1163_vm9, %v874_v26 }
 0x198   :  { %403 = vmatprep.subr.mxu0 %v1043_v8 }
 0x199   :  { %801 = vmatpush1.msk.msra.mxu0 %vm1163_vm9, %v310_v27 }
 0x19a   :  { %405 = vmatprep.subr.mxu0 %v1043_v8 }
 0x19b   :  { %802 = vmatpush1.msk.msra.mxu0 %vm1163_vm9, %v871_v23 }
 0x19c   :  { %407 = vmatprep.subr.mxu0 %v1043_v8 }
 0x19d   :  { %803 = vmatpush1.msk.msra.mxu0 %vm1163_vm9, %v300_v24 }
 0x19e   :  { %409 = vmatprep.subr.mxu0 %v1043_v8 }
 0x19f   :  { %804 = vmatpush1.msk.msra.mxu0 %vm1163_vm9, %v864_v20 }
 0x1a0   :  { %411 = vmatprep.subr.mxu0 %v1043_v8 }
 0x1a1   :  { %805 = vmatpush1.msk.msra.mxu0 %vm1163_vm9, %v225_v21 }
 0x1a2   :  { %413 = vmatprep.subr.mxu0 %v1043_v8 }
 0x1a3   :  { %806 = vmatpush1.msk.msra.mxu0 %vm1163_vm9, %v1132_v15 }
 0x1a4   :  { %415 = vmatprep.subr.mxu0 %v1043_v8 }
 0x1a5   :  { %807 = vmatpush1.msk.msra.mxu0 %vm1163_vm9, %v1135_v17 }
 0x1a6   :  { %433 = vmatprep.subr.mxu0 %v1043_v8 }
 0x1a7   :  { %808 = vmatpush2.msk.msra.mxu0 %vm1193_vm11, %v874_v26 }
 0x1a8   :  { %435 = vmatprep.subr.mxu0 %v1043_v8 }
 0x1a9   :  { %809 = vmatpush2.msk.msra.mxu0 %vm1193_vm11, %v310_v27 }
 0x1aa   :  { %437 = vmatprep.subr.mxu0 %v1043_v8 }
 0x1ab   :  { %810 = vmatpush2.msk.msra.mxu0 %vm1193_vm11, %v871_v23 }
 0x1ac   :  { %439 = vmatprep.subr.mxu0 %v1043_v8 }
 0x1ad   :  { %811 = vmatpush2.msk.msra.mxu0 %vm1193_vm11, %v300_v24 }
 0x1ae   :  { %441 = vmatprep.subr.mxu0 %v1043_v8 }
 0x1af   :  { %812 = vmatpush2.msk.msra.mxu0 %vm1193_vm11, %v864_v20 }
 0x1b0   :  { %443 = vmatprep.subr.mxu0 %v1043_v8 }
 0x1b1   :  { %813 = vmatpush2.msk.msra.mxu0 %vm1193_vm11, %v225_v21 }
 0x1b2   :  { %445 = vmatprep.subr.mxu0 %v1043_v8 }
 0x1b3   :  { %814 = vmatpush2.msk.msra.mxu0 %vm1193_vm11, %v1132_v15 }
 0x1b4   :  { %447 = vmatprep.subr.mxu0 %v1043_v8 }
 0x1b5   :  { %815 = vmatpush2.msk.msra.mxu0 %vm1193_vm11, %v1135_v17 }
 0x1b6   :  { %450 = vmatmul.mubr.f32.vlgmr.msra.gmra.mxu0 %v364_v34 }
 0x1b7   :  { %817 = vmatprep.mubr.msk.f32.mxu0 %vm372_vm5, %v367_v35 }
 0x1ba   :  { %455 = vmatmul.mubr.f32.gmra.mxu0 %v366_v36 }
 0x1bb   :  { %818 = vmatprep.mubr.msk.f32.mxu0 %vm372_vm5, %v369_v37 }
 0x1be   :  { %460 = vmatmul.mubr.f32.gmra.mxu0 %v368_v38 }
 0x1bf   :  { %819 = vmatprep.mubr.msk.f32.mxu0 %vm372_vm5, %v371_v39 }
 0x1c2   :  { %465 = vmatmul.mubr.f32.gmra.mxu0 %v370_v40 }
 0x276   :  { %v451_v42 = vpop.f32.mrf.mxu0 }
 0x278   :  { %v453_v43 = vpop.f32.mrf.mxu0 }
 0x27a   :  { %v456_v44 = vpop.f32.mrf.mxu0 }
 0x27c   :  { %v458_v45 = vpop.f32.mrf.mxu0 }
 0x27e   :  { %v461_v46 = vpop.f32.mrf.mxu0 }
 0x280   :  { %v463_v47 = vpop.f32.mrf.mxu0 }
 0x282   :  { %v466_v48 = vpop.f32.mrf.mxu0 }
 0x283   :  { %875 = vmatprep.subr.msk.mxu1 %vm470_vm12, %v466_v48 }
 0x284   :  { %v468_v49 = vpop.f32.mrf.mxu0  ;;  %876 = vmatpush3.xpose.msk.msra.mxu1 %vm470_vm12, %v466_v48 }
 0x285   :  { %877 = vmatprep.subr.msk.mxu1 %vm470_vm12, %v461_v46 }
 0x288   :  { %878 = vmatpush3.xpose.msk.msra.mxu1 %vm470_vm12, %v461_v46 }
 0x289   :  { %879 = vmatprep.subr.msk.mxu1 %vm470_vm12, %v456_v44 }
 0x28c   :  { %880 = vmatpush3.xpose.msk.msra.mxu1 %vm470_vm12, %v456_v44 }
 0x28d   :  { %881 = vmatprep.subr.msk.mxu1 %vm470_vm12, %v451_v42 }
 0x290   :  { %882 = vmatpush3.xpose.msk.msra.mxu1 %vm470_vm12, %v451_v42 }
 0x293   :  { %884 = vmatmul.mubr.msk.f32.vlgmr.msra.gmra.mxu1 %vm470_vm12, %v103_v50 }
 0x353   :  { %v885_v51 = vpop.f32.mrf.mxu1 }
 0x354   :  { %v567_v52 = vmul.f32 0.70710677, %v885_v51  ;;  %v565_v37 = vmul.f32 0.5, %v885_v51 }
 0x355   :  { %v555_v53 = vpop.f32.mrf.mxu1 }
 0x356   :  { %vm569_vm13 = vcmp.ge.f32.partialorder %v567_v52, 0.0  ;;  %v566_v54 = vmul.f32 0.70710677, %v555_v53  ;;  %v564_v34 = vmul.f32 0.5, %v555_v53  ;;  %v665_v53 = vld [vmem:[#allocation8 + $0x10] sm:$0xff] }
 0x357   :  { %v571_v56 = vsel %vm569_vm13, 1.0, %v1045_v55 }
 0x358   :  { %v573_v57 = vmul.f32 %v571_v56, %v567_v52  ;;  %vm568_vm14 = vcmp.ge.f32.partialorder %v566_v54, 0.0  ;;  %v666_v52 = vld [vmem:[#allocation8 + $0x18] sm:$0xff] }
 0x359   :  { %v570_v58 = vsel %vm568_vm14, 1.0, %v1045_v55  ;;  %886 = vmatprep.subr.mxu1 %v666_v52  ;;  %v663_v55 = vld [vmem:[#allocation8] sm:$0xff] }
 0x35a   :  { %v575_v59 = vmul.f32 0.3275911, %v573_v57  ;;  %v572_v60 = vmul.f32 %v570_v58, %v566_v54  ;;  %v601_v0 = vmul.f32 %v573_v57, %v573_v57  ;;  %887 = vmatpush3.msra.mxu1 %v666_v52  ;;  %v664_v54 = vld [vmem:[#allocation8 + $0x8] sm:$0xff] }
 0x35b   :  { %888 = vmatprep.subr.mxu1 %v665_v53 }
 0x35c   :  { %v577_v61 = vadd.f32 1.0, %v575_v59  ;;  %v574_v62 = vmul.f32 0.3275911, %v572_v60  ;;  %v600_v1 = vmul.f32 %v572_v60, %v572_v60  ;;  %v603_v2 = vsub.f32 0.0, %v601_v0  ;;  %889 = vmatpush3.msra.mxu1 %v665_v53 }
 0x35d   :  { %890 = vmatprep.subr.mxu1 %v664_v54 }
 0x35e   :  { %910 = vrcp.f32 %v577_v61  ;;  %v576_v63 = vadd.f32 1.0, %v574_v62  ;;  %v602_v4 = vsub.f32 0.0, %v600_v1  ;;  %v606_v5 = vmul.f32 1.442695, %v603_v2  ;;  %891 = vmatpush3.msra.mxu1 %v664_v54  ;;  %v827_v1 = vld [vmem:[%s1274_s4] ss:$0 sm:$0xff] }
 0x35f   :  { %892 = vmatprep.subr.mxu1 %v663_v55 }
 0x360   :  { %912 = vrcp.f32 %v576_v63  ;;  %v604_v9 = vmul.f32 1.442695, %v602_v4  ;;  %893 = vmatpush3.msra.mxu1 %v663_v55  ;;  %v826_v63 = vld [vmem:[%s1273_s3] ss:$0 sm:$0xff]  ;;  %s1046_s3 = smov [#allocation10]  }
 0x361   :  { %914 = vpow2.f32 %v606_v5  ;;  %s764_s4 = sshll.u32 %s1046_s3, 4  ;;  %s765_s4 = int_to_ptr.vmem [resolvable:$true] %s764_s4 }
 0x362   :  { %916 = vpow2.f32 %v604_v9  ;;  %s1006_s27 = scalar_lea.vmem %s765_s4, 256  ;;  %p1011_p7 = scmp.lt.s32.totalorder %s765_s4, %s765_s4 }
 0x363   :  { %p1007_p6 = scmp.ne.s32.totalorder %s765_s4, %s1006_s27  ;;  %p1012_p8 = scmp.lt.s32.totalorder %s1006_s27, %s1006_s27 }
 0x365   :  { %p1013_p9 = por %p1012_p8, %p1011_p7 }
 0x367   :  { %p1014_p10 = pnand %p1013_p9, %p1007_p6 }
 0x36b   :  { %v911_v3 = vpop.eup %910 }
 0x36c   :  { %v583_v6 = vmul.f32 1.0614054, %v911_v3 }
 0x36d   :  { %v913_v7 = vpop.eup %912 }
 0x36e   :  { %v585_v8 = vadd.f32 -1.4531521, %v583_v6  ;;  %v582_v10 = vmul.f32 1.0614054, %v913_v7  ;;  %v915_v24 = vpop.eup %914 }
 0x36f   :  { %v917_v28 = vpop.eup %916 }
 0x370   :  { %v587_v11 = vmul.f32 %v911_v3, %v585_v8  ;;  %v584_v12 = vadd.f32 -1.4531521, %v582_v10  ;;  %v828_v8 = vld [vmem:[%s1276_s6] ss:$0 sm:$0xff] }
 0x372   :  { %v589_v13 = vadd.f32 1.4214138, %v587_v11  ;;  %v586_v14 = vmul.f32 %v913_v7, %v584_v12 }
 0x374   :  { %v591_v15 = vmul.f32 %v911_v3, %v589_v13  ;;  %v588_v16 = vadd.f32 1.4214138, %v586_v14 }
 0x376   :  { %v593_v17 = vadd.f32 -0.28449672, %v591_v15  ;;  %v590_v18 = vmul.f32 %v913_v7, %v588_v16 }
 0x378   :  { %v595_v19 = vmul.f32 %v911_v3, %v593_v17  ;;  %v592_v20 = vadd.f32 -0.28449672, %v590_v18 }
 0x37a   :  { %v597_v21 = vadd.f32 0.2548296, %v595_v19  ;;  %v594_v22 = vmul.f32 %v913_v7, %v592_v20 }
 0x37c   :  { %v599_v23 = vmul.f32 %v911_v3, %v597_v21  ;;  %v596_v25 = vadd.f32 0.2548296, %v594_v22 }
 0x37e   :  { %v609_v26 = vmul.f32 %v915_v24, %v599_v23  ;;  %v598_v27 = vmul.f32 %v913_v7, %v596_v25 }
 0x380   :  { %v611_v29 = vsub.f32 1.0, %v609_v26  ;;  %v608_v30 = vmul.f32 %v917_v28, %v598_v27 }
 0x382   :  { %v610_v31 = vsub.f32 1.0, %v608_v30  ;;  %v613_v32 = vmul.f32 %v611_v29, %v571_v56 }
 0x384   :  { %v612_v33 = vmul.f32 %v610_v31, %v570_v58  ;;  %v615_v36 = vadd.f32 1.0, %v613_v32 }
 0x386   :  { %v614_v35 = vadd.f32 1.0, %v612_v33  ;;  %v617_v40 = vmul.f32 %v615_v36, %v565_v37 }
 0x388   :  { %v616_v38 = vmul.f32 %v614_v35, %v564_v34  ;;  %v621_v41 = vsel %vm470_vm12, %v617_v40, 0.0 }
 0x38a   :  { %v618_v39 = vsel %vm470_vm12, %v616_v38, 0.0 }
 0x38b   :  { %619 = vadd.xlane.f32.xlu1 %v618_v39 }
 0x38f   :  { %622 = vadd.xlane.f32.xlu1 %v621_v41 }
 0x414   :  { %v620_v42 = vpop.xlane.xlu1 %619 }
 0x415   :  { %v625_v43 = vmul.f32 0.03125, %v620_v42 }
 0x417   :  { %v627_v44 = vsub.f32 %v616_v38, %v625_v43 }
 0x418   :  { %v623_v45 = vpop.xlane.xlu1 %622 }
 0x419   :  { %v626_v46 = vmul.f32 0.03125, %v623_v45  ;;  %v629_v47 = vmul.f32 %v627_v44, %v627_v44 }
 0x41b   :  { %v628_v48 = vsub.f32 %v617_v40, %v626_v46  ;;  %v631_v49 = vsel %vm470_vm12, %v629_v47, 0.0 }
 0x41c   :  { %632 = vadd.xlane.f32.xlu0 %v631_v49 }
 0x41d   :  { %v630_v50 = vmul.f32 %v628_v48, %v628_v48 }
 0x41f   :  { %v634_v51 = vsel %vm470_vm12, %v630_v50, 0.0 }
 0x420   :  { %635 = vadd.xlane.f32.xlu1 %v634_v51 }
 0x4a5   :  { %v633_v56 = vpop.xlane.xlu0 %632 }
 0x4a6   :  { %v637_v57 = vmul.f32 0.03125, %v633_v56 }
 0x4a8   :  { %v639_v58 = vadd.f32 1e-05, %v637_v57 }
 0x4a9   :  { %v636_v59 = vpop.xlane.xlu1 %635 }
 0x4aa   :  { %918 = vrsqrt.f32 %v639_v58  ;;  %v638_v60 = vmul.f32 0.03125, %v636_v59 }
 0x4ac   :  { %v640_v61 = vadd.f32 1e-05, %v638_v60 }
 0x4ae   :  { %920 = vrsqrt.f32 %v640_v61 }
 0x4b7   :  { %v919_v62 = vpop.eup %918 }
 0x4b8   :  { %v643_v0 = vmul.f32 %v919_v62, %v627_v44 }
 0x4ba   :  { %v652_v2 = vmul.f32 %v826_v63, %v643_v0 }
 0x4bb   :  { %v921_v3 = vpop.eup %920 }
 0x4bc   :  { %v644_v4 = vmul.f32 %v921_v3, %v628_v48  ;;  %v661_v5 = vadd.f32 %v827_v1, %v652_v2 }
 0x4be   :  { %v653_v6 = vmul.f32 %v826_v63, %v644_v4  ;;  %894 = vmatprep.mubr.msk.f32.mxu1 %vm470_vm12, %v661_v5 }
 0x4c0   :  { %v662_v7 = vadd.f32 %v827_v1, %v653_v6 }
 0x4c2   :  { %895 = vmatmul.mubr.msk.f32.vlgmr.msra.gmra.mxu1 %vm470_vm12, %v662_v7 }
 0x582   :  { %v896_v9 = vpop.f32.mrf.mxu1 }
 0x583   :  { %v752_v10 = vadd.f32 %v896_v9, %v828_v8 }
 0x584   :  { %v746_v11 = vpop.f32.mrf.mxu1 }
 0x585   :  { %922 = vtanh.f32 %v752_v10  ;;  %v747_v12 = vadd.f32 %v828_v8, %v746_v11 }
 0x587   :  { %924 = vtanh.f32 %v747_v12 }
 0x592   :  { %v923_v13 = vpop.eup %922 }
 0x593   :  { %758 = vst.msk [vmem:[#allocation10 + $0x8] sm:$0xff] %vm470_vm12, %v923_v13 }
 0x594   :  { %v925_v14 = vpop.eup %924 }
 0x595   :  { %757 = vst.msk [vmem:[#allocation10] sm:$0xff] %vm470_vm12, %v925_v14 }
 0x596   :  { %1017 = shalt.err (!%p1014_p10)
}
 0x597   :  { %770 = dma.vmem_to_hbm [thread:$0]  %s765_s4, 256, %s1277_s7, [#allocation4], %s1036_s9, %s1036_s9, %s1037_s10  }
 0x598   :  { %1032 = dma.done.wait [#allocation4], 256  }
 0x599   :  { %1033 = vsyncadd [#allocation4], 4294967040 }
 0x59a   :  { %774 = vsyncpa [#allocation3], 1 }
 0x59b   :  { %775 = vsyncpa [#allocation6], 1 }
 0x59c   :  { %776 = vsyncpa [#allocation9], 1 }
 0x59d   :  { %777 = vsyncpa [#allocation4], 1 }

</bundles_post_ra>
